<compile_context>
chip_gen: v6e
topology: v6e:2x2x1
jax: 0.10.0
libtpu: 0.0.40
codegen_flags: <defaults>
</compile_context>

<pallas_src>
import functools

import jax
import jax.numpy as jnp
from jax import lax
from jax.experimental import pallas as pl
from jax.experimental.pallas import tpu as pltpu


def _pick_cout_tile(cout):
    """Largest Cout tile <= 256 that divides Cout (multiple of 8 if tiled)."""
    if cout <= 256:
        return cout
    for t in range(256, 7, -8):
        if cout % t == 0:
            return t
    return cout  # fall back to one (possibly large) tile


def _make_effective_weights(w):
    """w: (Cout, Cin, 3, 3) -> (4, 4, Cout, Cin) effective 2x2 weights.

    Index [a*2+b, r*2+s, co, ci]: output parity (a, b) (rows, cols), 2x2 tap
    (r, s) on the low-res grid.  Row tap r covers kernel rows {0} / {1,2} for
    a=0 and {0,1} / {2} for a=1; same grouping for columns with (b, s).
    """
    groups = [[(0,), (1, 2)], [(0, 1), (2,)]]
    par = []
    for a in range(2):
        for b in range(2):
            taps = []
            for r in range(2):
                for s in range(2):
                    wsum = jnp.zeros(w.shape[:2], jnp.float32)
                    for ky in groups[a][r]:
                        for kx in groups[b][s]:
                            wsum = wsum + w[:, :, ky, kx].astype(jnp.float32)
                    taps.append(wsum)
            par.append(jnp.stack(taps))           # (4, Cout, Cin)
    return jnp.stack(par)                         # (4, 4, Cout, Cin)


def _upsample_conv_kernel(x_ref, rc_ref, w_ref, b_ref, o_ref, xp_ref, *, H, W, P):
    """Fused nearest-2x upsample + 3x3 conv for one (batch, Cout-tile) block.

    x_ref : (1, Cin, H*W)        low-res input, flattened spatial on lanes
    rc_ref: (2, H*W) int32       row / col index of every flattened pixel
    w_ref : (4, 4, TCO, Cin)     effective 2x2 weights per output parity
    b_ref : (TCO, 1)             bias
    o_ref : (1, 2, 2, TCO, H*W)  parity-split output
    xp_ref: (Cin, H*W + 2*P) f32 scratch: [zero halo | x | zero halo]
    """
    HW = H * W
    cin = x_ref.shape[1]

    # In-kernel halo handling (replaces the old wrapper-side jnp.pad).
    xp_ref[:, 0:P] = jnp.zeros((cin, P), jnp.float32)
    xp_ref[:, P:P + HW] = x_ref[0].astype(jnp.float32)
    xp_ref[:, P + HW:P + HW + P] = jnp.zeros((cin, P), jnp.float32)

    row = rc_ref[0:1, :]                          # (1, HW) int32
    col = rc_ref[1:2, :]                          # (1, HW) int32
    bias = b_ref[...].astype(jnp.float32)         # (TCO, 1)

    for a in range(2):
        for b in range(2):
            acc = None
            for r in range(2):
                for s in range(2):
                    dy = a + r - 1                # in {-1, 0, 1}
                    dx = b + s - 1
                    # Shifted low-res view x[i+dy, j+dx] as a flat static slice.
                    start = P + dy * W + dx
                    v = xp_ref[:, start:start + HW]          # (Cin, HW)
                    # Zero out-of-range sources (conv zero padding + row wrap).
                    mask = None
                    if dy == -1:
                        mask = row >= 1
                    elif dy == 1:
                        mask = row < (H - 1)
                    if dx == -1:
                        cmask = col >= 1
                        mask = cmask if mask is None else (mask & cmask)
                    elif dx == 1:
                        cmask = col < (W - 1)
                        mask = cmask if mask is None else (mask & cmask)
                    if mask is not None:
                        v = jnp.where(mask, v, 0.0)
                    # MXU: (TCO, Cin) @ (Cin, HW), f32 accumulation.
                    t = jnp.dot(w_ref[a * 2 + b, r * 2 + s], v,
                                preferred_element_type=jnp.float32)
                    acc = t if acc is None else acc + t
            # Epilogue: single bias add per Cout tile, cast, lane-dense store.
            o_ref[0, a, b] = (acc + bias).astype(o_ref.dtype)


def upsample_forward(x, *, use_conv, conv_weight=None, conv_bias=None):
    """Equivalent of Upsample.forward (dims=2).  x: (N, C, H, W) NCHW."""
    N, C, H, W = x.shape

    if not use_conv:
        # Pure nearest-2x replication is memory-bound data movement; XLA's
        # broadcast+reshape already runs at the HBM roofline, while a Pallas
        # NCHW kernel would be forced into lane-sparse masked stores.
        # TODO(synk): lane-dense Pallas variant needs an in-register column
        # interleave (lane-strided store / gather).
        up = jnp.broadcast_to(x[:, :, :, None, :, None], (N, C, H, 2, W, 2))
        return up.reshape(N, C, 2 * H, 2 * W)

    Cout, Cin = conv_weight.shape[0], conv_weight.shape[1]
    assert Cin == C, "Upsample conv expects Cin == channels"
    HW = H * W
    P = ((W + 1 + 127) // 128) * 128          # halo >= W+1, lane-aligned
    TCO = _pick_cout_tile(Cout)
    n_ct = Cout // TCO

    x_flat = x.reshape(N, C, HW)              # free reshape, no pad / copy
    weff = _make_effective_weights(conv_weight)           # (4, 4, Cout, Cin)
    bias = conv_bias.astype(jnp.float32).reshape(Cout, 1)
    ii = jnp.arange(H, dtype=jnp.int32)
    jj = jnp.arange(W, dtype=jnp.int32)
    rc = jnp.stack([jnp.repeat(ii, W), jnp.tile(jj, H)])   # (2, HW) int32

    # TODO(synk): tile H*W (with halo DMA) for very large spatial extents; the
    # full low-res plane currently lives in VMEM per grid step.
    kern = functools.partial(_upsample_conv_kernel, H=H, W=W, P=P)
    out5 = pl.pallas_call(
        kern,
        out_shape=jax.ShapeDtypeStruct((N, 2, 2, Cout, HW), x.dtype),
        grid_spec=pltpu.PrefetchScalarGridSpec(
            num_scalar_prefetch=0,
            grid=(N, n_ct),
            in_specs=[
                pl.BlockSpec((1, C, HW), lambda n, c: (n, 0, 0)),
                pl.BlockSpec((2, HW), lambda n, c: (0, 0)),
                pl.BlockSpec((4, 4, TCO, Cin), lambda n, c: (0, 0, c, 0)),
                pl.BlockSpec((TCO, 1), lambda n, c: (c, 0)),
            ],
            out_specs=pl.BlockSpec((1, 2, 2, TCO, HW),
                                   lambda n, c: (n, 0, 0, c, 0)),
            scratch_shapes=[pltpu.VMEM((C, HW + 2 * P), jnp.float32)],
        ),
        compiler_params=pltpu.CompilerParams(
            dimension_semantics=("parallel", "parallel"),
            vmem_limit_bytes=32 * 1024 * 1024,
        ),
    )(x_flat, rc, weff, bias)

    # Parity interleave: out[n, co, 2i+a, 2j+b] = out5[n, a, b, co, i*W+j].
    # One fused XLA pass; an in-kernel interleave would need lane-strided
    # stores whose lowering is not guaranteed on all generations.
    out = out5.reshape(N, 2, 2, Cout, H, W).transpose(0, 3, 4, 1, 5, 2)
    return out.reshape(N, Cout, 2 * H, 2 * W)


def _reference(x, use_conv, w, b):
    up = jnp.repeat(jnp.repeat(x, 2, axis=2), 2, axis=3)
    if use_conv:
        up = lax.conv_general_dilated(
            up, w, window_strides=(1, 1), padding=((1, 1), (1, 1)),
            dimension_numbers=("NCHW", "OIHW", "NCHW"))
        up = up + b[None, :, None, None]
    return up


if __name__ == "__main__":
    key = jax.random.PRNGKey(0)
    kx, kw, kb = jax.random.split(key, 3)

    N, C, H, W = 2, 4, 16, 16
    x = jax.random.normal(kx, (N, C, H, W), jnp.float32)

    # Deterministic parameters with nn.Conv2d(C, C, 3, padding=1) shapes.
    fan_in = C * 3 * 3
    bound = 1.0 / (fan_in ** 0.5)
    w = jax.random.uniform(kw, (C, C, 3, 3), jnp.float32, -bound, bound)
    b = jax.random.uniform(kb, (C,), jnp.float32, -bound, bound)

    # use_conv=True path (the Pallas kernel)
    out = jax.block_until_ready(
        upsample_forward(x, use_conv=True, conv_weight=w, conv_bias=b))
    ref = _reference(x, True, w, b)
    assert out.shape == (N, C, 2 * H, 2 * W)
    err = float(jnp.max(jnp.abs(out - ref)))
    assert jnp.allclose(out, ref, atol=1e-3, rtol=1e-3), (
        f"conv path mismatch: max abs err {err:.3e}")

    # use_conv=False path
    out_nc = jax.block_until_ready(upsample_forward(x, use_conv=False))
    ref_nc = _reference(x, False, None, None)
    assert out_nc.shape == (N, C, 2 * H, 2 * W)
    assert jnp.allclose(out_nc, ref_nc), "upsample-only path mismatch"

    print("KERNEL_OK")
</pallas_src>

<mosaic_0001>
module attributes {stable_mosaic.version = 11 : i64} {
  func.func @_upsample_conv_kernel(%arg0: i32, %arg1: i32, %arg2: memref<1x4x256xf32, #tpu.memory_space<vmem>>, %arg3: memref<2x256xi32, #tpu.memory_space<vmem>>, %arg4: memref<4x4x4x4xf32, #tpu.memory_space<vmem>>, %arg5: memref<4x1xf32, #tpu.memory_space<vmem>>, %arg6: memref<1x2x2x4x256xf32, #tpu.memory_space<vmem>>, %arg7: memref<4x512xf32, #tpu.memory_space<vmem>>) attributes {dimension_semantics = [#tpu.dimension_semantics<parallel>, #tpu.dimension_semantics<parallel>], iteration_bounds = array<i64: 2, 1>, scalar_prefetch = 0 : i64, scratch_operands = 1 : i64, tpu.core_type = #tpu.core_type<tc>, window_params = [{transform_indices = @transform_0, window_bounds = array<i64: 1, 4, 256>}, {pipeline_mode = #tpu.pipeline_mode<synchronous>, transform_indices = @transform_1, window_bounds = array<i64: 2, 256>}, {transform_indices = @transform_2, window_bounds = array<i64: 4, 4, 4, 4>}, {transform_indices = @transform_3, window_bounds = array<i64: 4, 1>}, {transform_indices = @transform_4, window_bounds = array<i64: 1, 2, 2, 4, 256>}]} {
    %cst = arith.constant 0.000000e+00 : f32
    %0 = vector.broadcast %cst : f32 to vector<4x128xf32>
    %c0 = arith.constant 0 : index
    %c0_0 = arith.constant 0 : index
    %1 = vector.load %arg7[%c0, %c0_0] : memref<4x512xf32, #tpu.memory_space<vmem>>, vector<4x128xf32>
    tpu.vector_store %arg7[%c0, %c0_0], %0 {strides = array<i32>} : memref<4x512xf32, #tpu.memory_space<vmem>>, vector<4x128xf32>,
    %c0_1 = arith.constant 0 : index
    %c0_2 = arith.constant 0 : index
    %c0_3 = arith.constant 0 : index
    %2 = vector.load %arg2[%c0_1, %c0_2, %c0_3] : memref<1x4x256xf32, #tpu.memory_space<vmem>>, vector<1x4x256xf32>
    %3 = vector.shape_cast %2 : vector<1x4x256xf32> to vector<4x256xf32>
    %c0_4 = arith.constant 0 : index
    %c128 = arith.constant 128 : index
    %4 = vector.load %arg7[%c0_4, %c128] : memref<4x512xf32, #tpu.memory_space<vmem>>, vector<4x256xf32>
    tpu.vector_store %arg7[%c0_4, %c128], %3 {strides = array<i32>} : memref<4x512xf32, #tpu.memory_space<vmem>>, vector<4x256xf32>,
    %cst_5 = arith.constant 0.000000e+00 : f32
    %5 = vector.broadcast %cst_5 : f32 to vector<4x128xf32>
    %c0_6 = arith.constant 0 : index
    %c384 = arith.constant 384 : index
    %6 = vector.load %arg7[%c0_6, %c384] : memref<4x512xf32, #tpu.memory_space<vmem>>, vector<4x128xf32>
    tpu.vector_store %arg7[%c0_6, %c384], %5 {strides = array<i32>} : memref<4x512xf32, #tpu.memory_space<vmem>>, vector<4x128xf32>,
    %c0_7 = arith.constant 0 : index
    %c0_8 = arith.constant 0 : index
    %7 = vector.load %arg3[%c0_7, %c0_8] : memref<2x256xi32, #tpu.memory_space<vmem>>, vector<1x256xi32>
    %c1 = arith.constant 1 : index
    %c0_9 = arith.constant 0 : index
    %8 = vector.load %arg3[%c1, %c0_9] : memref<2x256xi32, #tpu.memory_space<vmem>>, vector<1x256xi32>
    %c0_10 = arith.constant 0 : index
    %c0_11 = arith.constant 0 : index
    %9 = vector.load %arg5[%c0_10, %c0_11] : memref<4x1xf32, #tpu.memory_space<vmem>>, vector<4x1xf32>
    %c0_12 = arith.constant 0 : index
    %c111 = arith.constant 111 : index
    %10 = vector.load %arg7[%c0_12, %c111] : memref<4x512xf32, #tpu.memory_space<vmem>>, vector<4x256xf32>
    %c1_i32 = arith.constant 1 : i32
    %11 = vector.broadcast %c1_i32 : i32 to vector<1x256xi32>
    %12 = arith.cmpi sge, %7, %11 : vector<1x256xi32>
    %c1_i32_13 = arith.constant 1 : i32
    %13 = vector.broadcast %c1_i32_13 : i32 to vector<1x256xi32>
    %14 = arith.cmpi sge, %8, %13 : vector<1x256xi32>
    %15 = arith.andi %12, %14 : vector<1x256xi1>
    %cst_14 = arith.constant 0.000000e+00 : f32
    %16 = vector.shape_cast %15 : vector<1x256xi1> to vector<1x256xi1>
    %17 = vector.broadcast %16 : vector<1x256xi1> to vector<4x256xi1>
    %18 = vector.broadcast %cst_14 : f32 to vector<4x256xf32>
    %19 = arith.select %17, %10, %18 : vector<4x256xi1>, vector<4x256xf32>
    %c0_15 = arith.constant 0 : index
    %c0_16 = arith.constant 0 : index
    %c0_17 = arith.constant 0 : index
    %c0_18 = arith.constant 0 : index
    %20 = vector.load %arg4[%c0_15, %c0_16, %c0_17, %c0_18] : memref<4x4x4x4xf32, #tpu.memory_space<vmem>>, vector<1x1x4x4xf32>
    %21 = vector.shape_cast %20 : vector<1x1x4x4xf32> to vector<4x4xf32>
    %cst_19 = arith.constant dense<0.000000e+00> : vector<4x256xf32>
    %22 = tpu.matmul %21, %19, %cst_19 {dimension_numbers = #tpu.dot_dimension_numbers<[1], [0], [0], [1], [0, 0, 1, 1], [], []>} : vector<4x4xf32>, vector<4x256xf32>, vector<4x256xf32> -> vector<4x256xf32>
    %c0_20 = arith.constant 0 : index
    %c112 = arith.constant 112 : index
    %23 = vector.load %arg7[%c0_20, %c112] : memref<4x512xf32, #tpu.memory_space<vmem>>, vector<4x256xf32>
    %c1_i32_21 = arith.constant 1 : i32
    %24 = vector.broadcast %c1_i32_21 : i32 to vector<1x256xi32>
    %25 = arith.cmpi sge, %7, %24 : vector<1x256xi32>
    %cst_22 = arith.constant 0.000000e+00 : f32
    %26 = vector.shape_cast %25 : vector<1x256xi1> to vector<1x256xi1>
    %27 = vector.broadcast %26 : vector<1x256xi1> to vector<4x256xi1>
    %28 = vector.broadcast %cst_22 : f32 to vector<4x256xf32>
    %29 = arith.select %27, %23, %28 : vector<4x256xi1>, vector<4x256xf32>
    %c0_23 = arith.constant 0 : index
    %c1_24 = arith.constant 1 : index
    %c0_25 = arith.constant 0 : index
    %c0_26 = arith.constant 0 : index
    %30 = vector.load %arg4[%c0_23, %c1_24, %c0_25, %c0_26] : memref<4x4x4x4xf32, #tpu.memory_space<vmem>>, vector<1x1x4x4xf32>
    %31 = vector.shape_cast %30 : vector<1x1x4x4xf32> to vector<4x4xf32>
    %cst_27 = arith.constant dense<0.000000e+00> : vector<4x256xf32>
    %32 = tpu.matmul %31, %29, %cst_27 {dimension_numbers = #tpu.dot_dimension_numbers<[1], [0], [0], [1], [0, 0, 1, 1], [], []>} : vector<4x4xf32>, vector<4x256xf32>, vector<4x256xf32> -> vector<4x256xf32>
    %33 = arith.addf %22, %32 : vector<4x256xf32>
    %c0_28 = arith.constant 0 : index
    %c127 = arith.constant 127 : index
    %34 = vector.load %arg7[%c0_28, %c127] : memref<4x512xf32, #tpu.memory_space<vmem>>, vector<4x256xf32>
    %c1_i32_29 = arith.constant 1 : i32
    %35 = vector.broadcast %c1_i32_29 : i32 to vector<1x256xi32>
    %36 = arith.cmpi sge, %8, %35 : vector<1x256xi32>
    %cst_30 = arith.constant 0.000000e+00 : f32
    %37 = vector.shape_cast %36 : vector<1x256xi1> to vector<1x256xi1>
    %38 = vector.broadcast %37 : vector<1x256xi1> to vector<4x256xi1>
    %39 = vector.broadcast %cst_30 : f32 to vector<4x256xf32>
    %40 = arith.select %38, %34, %39 : vector<4x256xi1>, vector<4x256xf32>
    %c0_31 = arith.constant 0 : index
    %c2 = arith.constant 2 : index
    %c0_32 = arith.constant 0 : index
    %c0_33 = arith.constant 0 : index
    %41 = vector.load %arg4[%c0_31, %c2, %c0_32, %c0_33] : memref<4x4x4x4xf32, #tpu.memory_space<vmem>>, vector<1x1x4x4xf32>
    %42 = vector.shape_cast %41 : vector<1x1x4x4xf32> to vector<4x4xf32>
    %cst_34 = arith.constant dense<0.000000e+00> : vector<4x256xf32>
    %43 = tpu.matmul %42, %40, %cst_34 {dimension_numbers = #tpu.dot_dimension_numbers<[1], [0], [0], [1], [0, 0, 1, 1], [], []>} : vector<4x4xf32>, vector<4x256xf32>, vector<4x256xf32> -> vector<4x256xf32>
    %44 = arith.addf %33, %43 : vector<4x256xf32>
    %c0_35 = arith.constant 0 : index
    %c128_36 = arith.constant 128 : index
    %45 = vector.load %arg7[%c0_35, %c128_36] : memref<4x512xf32, #tpu.memory_space<vmem>>, vector<4x256xf32>
    %c0_37 = arith.constant 0 : index
    %c3 = arith.constant 3 : index
    %c0_38 = arith.constant 0 : index
    %c0_39 = arith.constant 0 : index
    %46 = vector.load %arg4[%c0_37, %c3, %c0_38, %c0_39] : memref<4x4x4x4xf32, #tpu.memory_space<vmem>>, vector<1x1x4x4xf32>
    %47 = vector.shape_cast %46 : vector<1x1x4x4xf32> to vector<4x4xf32>
    %cst_40 = arith.constant dense<0.000000e+00> : vector<4x256xf32>
    %48 = tpu.matmul %47, %45, %cst_40 {dimension_numbers = #tpu.dot_dimension_numbers<[1], [0], [0], [1], [0, 0, 1, 1], [], []>} : vector<4x4xf32>, vector<4x256xf32>, vector<4x256xf32> -> vector<4x256xf32>
    %49 = arith.addf %44, %48 : vector<4x256xf32>
    %50 = vector.broadcast %9 : vector<4x1xf32> to vector<4x256xf32>
    %51 = arith.addf %49, %50 : vector<4x256xf32>
    %c0_41 = arith.constant 0 : index
    %c0_42 = arith.constant 0 : index
    %c0_43 = arith.constant 0 : index
    %c0_44 = arith.constant 0 : index
    %c0_45 = arith.constant 0 : index
    %52 = vector.load %arg6[%c0_41, %c0_42, %c0_43, %c0_44, %c0_45] : memref<1x2x2x4x256xf32, #tpu.memory_space<vmem>>, vector<1x1x1x4x256xf32>
    %53 = vector.shape_cast %52 : vector<1x1x1x4x256xf32> to vector<4x256xf32>
    %54 = vector.shape_cast %51 : vector<4x256xf32> to vector<1x1x1x4x256xf32>
    tpu.vector_store %arg6[%c0_41, %c0_42, %c0_43, %c0_44, %c0_45], %54 {strides = array<i32>} : memref<1x2x2x4x256xf32, #tpu.memory_space<vmem>>, vector<1x1x1x4x256xf32>,
    %c0_46 = arith.constant 0 : index
    %c112_47 = arith.constant 112 : index
    %55 = vector.load %arg7[%c0_46, %c112_47] : memref<4x512xf32, #tpu.memory_space<vmem>>, vector<4x256xf32>
    %c1_i32_48 = arith.constant 1 : i32
    %56 = vector.broadcast %c1_i32_48 : i32 to vector<1x256xi32>
    %57 = arith.cmpi sge, %7, %56 : vector<1x256xi32>
    %cst_49 = arith.constant 0.000000e+00 : f32
    %58 = vector.shape_cast %57 : vector<1x256xi1> to vector<1x256xi1>
    %59 = vector.broadcast %58 : vector<1x256xi1> to vector<4x256xi1>
    %60 = vector.broadcast %cst_49 : f32 to vector<4x256xf32>
    %61 = arith.select %59, %55, %60 : vector<4x256xi1>, vector<4x256xf32>
    %c1_50 = arith.constant 1 : index
    %c0_51 = arith.constant 0 : index
    %c0_52 = arith.constant 0 : index
    %c0_53 = arith.constant 0 : index
    %62 = vector.load %arg4[%c1_50, %c0_51, %c0_52, %c0_53] : memref<4x4x4x4xf32, #tpu.memory_space<vmem>>, vector<1x1x4x4xf32>
    %63 = vector.shape_cast %62 : vector<1x1x4x4xf32> to vector<4x4xf32>
    %cst_54 = arith.constant dense<0.000000e+00> : vector<4x256xf32>
    %64 = tpu.matmul %63, %61, %cst_54 {dimension_numbers = #tpu.dot_dimension_numbers<[1], [0], [0], [1], [0, 0, 1, 1], [], []>} : vector<4x4xf32>, vector<4x256xf32>, vector<4x256xf32> -> vector<4x256xf32>
    %c0_55 = arith.constant 0 : index
    %c113 = arith.constant 113 : index
    %65 = vector.load %arg7[%c0_55, %c113] : memref<4x512xf32, #tpu.memory_space<vmem>>, vector<4x256xf32>
    %c1_i32_56 = arith.constant 1 : i32
    %66 = vector.broadcast %c1_i32_56 : i32 to vector<1x256xi32>
    %67 = arith.cmpi sge, %7, %66 : vector<1x256xi32>
    %c15_i32 = arith.constant 15 : i32
    %68 = vector.broadcast %c15_i32 : i32 to vector<1x256xi32>
    %69 = arith.cmpi slt, %8, %68 : vector<1x256xi32>
    %70 = arith.andi %67, %69 : vector<1x256xi1>
    %cst_57 = arith.constant 0.000000e+00 : f32
    %71 = vector.shape_cast %70 : vector<1x256xi1> to vector<1x256xi1>
    %72 = vector.broadcast %71 : vector<1x256xi1> to vector<4x256xi1>
    %73 = vector.broadcast %cst_57 : f32 to vector<4x256xf32>
    %74 = arith.select %72, %65, %73 : vector<4x256xi1>, vector<4x256xf32>
    %c1_58 = arith.constant 1 : index
    %c1_59 = arith.constant 1 : index
    %c0_60 = arith.constant 0 : index
    %c0_61 = arith.constant 0 : index
    %75 = vector.load %arg4[%c1_58, %c1_59, %c0_60, %c0_61] : memref<4x4x4x4xf32, #tpu.memory_space<vmem>>, vector<1x1x4x4xf32>
    %76 = vector.shape_cast %75 : vector<1x1x4x4xf32> to vector<4x4xf32>
    %cst_62 = arith.constant dense<0.000000e+00> : vector<4x256xf32>
    %77 = tpu.matmul %76, %74, %cst_62 {dimension_numbers = #tpu.dot_dimension_numbers<[1], [0], [0], [1], [0, 0, 1, 1], [], []>} : vector<4x4xf32>, vector<4x256xf32>, vector<4x256xf32> -> vector<4x256xf32>
    %78 = arith.addf %64, %77 : vector<4x256xf32>
    %c0_63 = arith.constant 0 : index
    %c128_64 = arith.constant 128 : index
    %79 = vector.load %arg7[%c0_63, %c128_64] : memref<4x512xf32, #tpu.memory_space<vmem>>, vector<4x256xf32>
    %c1_65 = arith.constant 1 : index
    %c2_66 = arith.constant 2 : index
    %c0_67 = arith.constant 0 : index
    %c0_68 = arith.constant 0 : index
    %80 = vector.load %arg4[%c1_65, %c2_66, %c0_67, %c0_68] : memref<4x4x4x4xf32, #tpu.memory_space<vmem>>, vector<1x1x4x4xf32>
    %81 = vector.shape_cast %80 : vector<1x1x4x4xf32> to vector<4x4xf32>
    %cst_69 = arith.constant dense<0.000000e+00> : vector<4x256xf32>
    %82 = tpu.matmul %81, %79, %cst_69 {dimension_numbers = #tpu.dot_dimension_numbers<[1], [0], [0], [1], [0, 0, 1, 1], [], []>} : vector<4x4xf32>, vector<4x256xf32>, vector<4x256xf32> -> vector<4x256xf32>
    %83 = arith.addf %78, %82 : vector<4x256xf32>
    %c0_70 = arith.constant 0 : index
    %c129 = arith.constant 129 : index
    %84 = vector.load %arg7[%c0_70, %c129] : memref<4x512xf32, #tpu.memory_space<vmem>>, vector<4x256xf32>
    %c15_i32_71 = arith.constant 15 : i32
    %85 = vector.broadcast %c15_i32_71 : i32 to vector<1x256xi32>
    %86 = arith.cmpi slt, %8, %85 : vector<1x256xi32>
    %cst_72 = arith.constant 0.000000e+00 : f32
    %87 = vector.shape_cast %86 : vector<1x256xi1> to vector<1x256xi1>
    %88 = vector.broadcast %87 : vector<1x256xi1> to vector<4x256xi1>
    %89 = vector.broadcast %cst_72 : f32 to vector<4x256xf32>
    %90 = arith.select %88, %84, %89 : vector<4x256xi1>, vector<4x256xf32>
    %c1_73 = arith.constant 1 : index
    %c3_74 = arith.constant 3 : index
    %c0_75 = arith.constant 0 : index
    %c0_76 = arith.constant 0 : index
    %91 = vector.load %arg4[%c1_73, %c3_74, %c0_75, %c0_76] : memref<4x4x4x4xf32, #tpu.memory_space<vmem>>, vector<1x1x4x4xf32>
    %92 = vector.shape_cast %91 : vector<1x1x4x4xf32> to vector<4x4xf32>
    %cst_77 = arith.constant dense<0.000000e+00> : vector<4x256xf32>
    %93 = tpu.matmul %92, %90, %cst_77 {dimension_numbers = #tpu.dot_dimension_numbers<[1], [0], [0], [1], [0, 0, 1, 1], [], []>} : vector<4x4xf32>, vector<4x256xf32>, vector<4x256xf32> -> vector<4x256xf32>
    %94 = arith.addf %83, %93 : vector<4x256xf32>
    %95 = vector.broadcast %9 : vector<4x1xf32> to vector<4x256xf32>
    %96 = arith.addf %94, %95 : vector<4x256xf32>
    %c0_78 = arith.constant 0 : index
    %c0_79 = arith.constant 0 : index
    %c1_80 = arith.constant 1 : index
    %c0_81 = arith.constant 0 : index
    %c0_82 = arith.constant 0 : index
    %97 = vector.load %arg6[%c0_78, %c0_79, %c1_80, %c0_81, %c0_82] : memref<1x2x2x4x256xf32, #tpu.memory_space<vmem>>, vector<1x1x1x4x256xf32>
    %98 = vector.shape_cast %97 : vector<1x1x1x4x256xf32> to vector<4x256xf32>
    %99 = vector.shape_cast %96 : vector<4x256xf32> to vector<1x1x1x4x256xf32>
    tpu.vector_store %arg6[%c0_78, %c0_79, %c1_80, %c0_81, %c0_82], %99 {strides = array<i32>} : memref<1x2x2x4x256xf32, #tpu.memory_space<vmem>>, vector<1x1x1x4x256xf32>,
    %c0_83 = arith.constant 0 : index
    %c127_84 = arith.constant 127 : index
    %100 = vector.load %arg7[%c0_83, %c127_84] : memref<4x512xf32, #tpu.memory_space<vmem>>, vector<4x256xf32>
    %c1_i32_85 = arith.constant 1 : i32
    %101 = vector.broadcast %c1_i32_85 : i32 to vector<1x256xi32>
    %102 = arith.cmpi sge, %8, %101 : vector<1x256xi32>
    %cst_86 = arith.constant 0.000000e+00 : f32
    %103 = vector.shape_cast %102 : vector<1x256xi1> to vector<1x256xi1>
    %104 = vector.broadcast %103 : vector<1x256xi1> to vector<4x256xi1>
    %105 = vector.broadcast %cst_86 : f32 to vector<4x256xf32>
    %106 = arith.select %104, %100, %105 : vector<4x256xi1>, vector<4x256xf32>
    %c2_87 = arith.constant 2 : index
    %c0_88 = arith.constant 0 : index
    %c0_89 = arith.constant 0 : index
    %c0_90 = arith.constant 0 : index
    %107 = vector.load %arg4[%c2_87, %c0_88, %c0_89, %c0_90] : memref<4x4x4x4xf32, #tpu.memory_space<vmem>>, vector<1x1x4x4xf32>
    %108 = vector.shape_cast %107 : vector<1x1x4x4xf32> to vector<4x4xf32>
    %cst_91 = arith.constant dense<0.000000e+00> : vector<4x256xf32>
    %109 = tpu.matmul %108, %106, %cst_91 {dimension_numbers = #tpu.dot_dimension_numbers<[1], [0], [0], [1], [0, 0, 1, 1], [], []>} : vector<4x4xf32>, vector<4x256xf32>, vector<4x256xf32> -> vector<4x256xf32>
    %c0_92 = arith.constant 0 : index
    %c128_93 = arith.constant 128 : index
    %110 = vector.load %arg7[%c0_92, %c128_93] : memref<4x512xf32, #tpu.memory_space<vmem>>, vector<4x256xf32>
    %c2_94 = arith.constant 2 : index
    %c1_95 = arith.constant 1 : index
    %c0_96 = arith.constant 0 : index
    %c0_97 = arith.constant 0 : index
    %111 = vector.load %arg4[%c2_94, %c1_95, %c0_96, %c0_97] : memref<4x4x4x4xf32, #tpu.memory_space<vmem>>, vector<1x1x4x4xf32>
    %112 = vector.shape_cast %111 : vector<1x1x4x4xf32> to vector<4x4xf32>
    %cst_98 = arith.constant dense<0.000000e+00> : vector<4x256xf32>
    %113 = tpu.matmul %112, %110, %cst_98 {dimension_numbers = #tpu.dot_dimension_numbers<[1], [0], [0], [1], [0, 0, 1, 1], [], []>} : vector<4x4xf32>, vector<4x256xf32>, vector<4x256xf32> -> vector<4x256xf32>
    %114 = arith.addf %109, %113 : vector<4x256xf32>
    %c0_99 = arith.constant 0 : index
    %c143 = arith.constant 143 : index
    %115 = vector.load %arg7[%c0_99, %c143] : memref<4x512xf32, #tpu.memory_space<vmem>>, vector<4x256xf32>
    %c15_i32_100 = arith.constant 15 : i32
    %116 = vector.broadcast %c15_i32_100 : i32 to vector<1x256xi32>
    %117 = arith.cmpi slt, %7, %116 : vector<1x256xi32>
    %c1_i32_101 = arith.constant 1 : i32
    %118 = vector.broadcast %c1_i32_101 : i32 to vector<1x256xi32>
    %119 = arith.cmpi sge, %8, %118 : vector<1x256xi32>
    %120 = arith.andi %117, %119 : vector<1x256xi1>
    %cst_102 = arith.constant 0.000000e+00 : f32
    %121 = vector.shape_cast %120 : vector<1x256xi1> to vector<1x256xi1>
    %122 = vector.broadcast %121 : vector<1x256xi1> to vector<4x256xi1>
    %123 = vector.broadcast %cst_102 : f32 to vector<4x256xf32>
    %124 = arith.select %122, %115, %123 : vector<4x256xi1>, vector<4x256xf32>
    %c2_103 = arith.constant 2 : index
    %c2_104 = arith.constant 2 : index
    %c0_105 = arith.constant 0 : index
    %c0_106 = arith.constant 0 : index
    %125 = vector.load %arg4[%c2_103, %c2_104, %c0_105, %c0_106] : memref<4x4x4x4xf32, #tpu.memory_space<vmem>>, vector<1x1x4x4xf32>
    %126 = vector.shape_cast %125 : vector<1x1x4x4xf32> to vector<4x4xf32>
    %cst_107 = arith.constant dense<0.000000e+00> : vector<4x256xf32>
    %127 = tpu.matmul %126, %124, %cst_107 {dimension_numbers = #tpu.dot_dimension_numbers<[1], [0], [0], [1], [0, 0, 1, 1], [], []>} : vector<4x4xf32>, vector<4x256xf32>, vector<4x256xf32> -> vector<4x256xf32>
    %128 = arith.addf %114, %127 : vector<4x256xf32>
    %c0_108 = arith.constant 0 : index
    %c144 = arith.constant 144 : index
    %129 = vector.load %arg7[%c0_108, %c144] : memref<4x512xf32, #tpu.memory_space<vmem>>, vector<4x256xf32>
    %c15_i32_109 = arith.constant 15 : i32
    %130 = vector.broadcast %c15_i32_109 : i32 to vector<1x256xi32>
    %131 = arith.cmpi slt, %7, %130 : vector<1x256xi32>
    %cst_110 = arith.constant 0.000000e+00 : f32
    %132 = vector.shape_cast %131 : vector<1x256xi1> to vector<1x256xi1>
    %133 = vector.broadcast %132 : vector<1x256xi1> to vector<4x256xi1>
    %134 = vector.broadcast %cst_110 : f32 to vector<4x256xf32>
    %135 = arith.select %133, %129, %134 : vector<4x256xi1>, vector<4x256xf32>
    %c2_111 = arith.constant 2 : index
    %c3_112 = arith.constant 3 : index
    %c0_113 = arith.constant 0 : index
    %c0_114 = arith.constant 0 : index
    %136 = vector.load %arg4[%c2_111, %c3_112, %c0_113, %c0_114] : memref<4x4x4x4xf32, #tpu.memory_space<vmem>>, vector<1x1x4x4xf32>
    %137 = vector.shape_cast %136 : vector<1x1x4x4xf32> to vector<4x4xf32>
    %cst_115 = arith.constant dense<0.000000e+00> : vector<4x256xf32>
    %138 = tpu.matmul %137, %135, %cst_115 {dimension_numbers = #tpu.dot_dimension_numbers<[1], [0], [0], [1], [0, 0, 1, 1], [], []>} : vector<4x4xf32>, vector<4x256xf32>, vector<4x256xf32> -> vector<4x256xf32>
    %139 = arith.addf %128, %138 : vector<4x256xf32>
    %140 = vector.broadcast %9 : vector<4x1xf32> to vector<4x256xf32>
    %141 = arith.addf %139, %140 : vector<4x256xf32>
    %c0_116 = arith.constant 0 : index
    %c1_117 = arith.constant 1 : index
    %c0_118 = arith.constant 0 : index
    %c0_119 = arith.constant 0 : index
    %c0_120 = arith.constant 0 : index
    %142 = vector.load %arg6[%c0_116, %c1_117, %c0_118, %c0_119, %c0_120] : memref<1x2x2x4x256xf32, #tpu.memory_space<vmem>>, vector<1x1x1x4x256xf32>
    %143 = vector.shape_cast %142 : vector<1x1x1x4x256xf32> to vector<4x256xf32>
    %144 = vector.shape_cast %141 : vector<4x256xf32> to vector<1x1x1x4x256xf32>
    tpu.vector_store %arg6[%c0_116, %c1_117, %c0_118, %c0_119, %c0_120], %144 {strides = array<i32>} : memref<1x2x2x4x256xf32, #tpu.memory_space<vmem>>, vector<1x1x1x4x256xf32>,
    %c0_121 = arith.constant 0 : index
    %c128_122 = arith.constant 128 : index
    %145 = vector.load %arg7[%c0_121, %c128_122] : memref<4x512xf32, #tpu.memory_space<vmem>>, vector<4x256xf32>
    %c3_123 = arith.constant 3 : index
    %c0_124 = arith.constant 0 : index
    %c0_125 = arith.constant 0 : index
    %c0_126 = arith.constant 0 : index
    %146 = vector.load %arg4[%c3_123, %c0_124, %c0_125, %c0_126] : memref<4x4x4x4xf32, #tpu.memory_space<vmem>>, vector<1x1x4x4xf32>
    %147 = vector.shape_cast %146 : vector<1x1x4x4xf32> to vector<4x4xf32>
    %cst_127 = arith.constant dense<0.000000e+00> : vector<4x256xf32>
    %148 = tpu.matmul %147, %145, %cst_127 {dimension_numbers = #tpu.dot_dimension_numbers<[1], [0], [0], [1], [0, 0, 1, 1], [], []>} : vector<4x4xf32>, vector<4x256xf32>, vector<4x256xf32> -> vector<4x256xf32>
    %c0_128 = arith.constant 0 : index
    %c129_129 = arith.constant 129 : index
    %149 = vector.load %arg7[%c0_128, %c129_129] : memref<4x512xf32, #tpu.memory_space<vmem>>, vector<4x256xf32>
    %c15_i32_130 = arith.constant 15 : i32
    %150 = vector.broadcast %c15_i32_130 : i32 to vector<1x256xi32>
    %151 = arith.cmpi slt, %8, %150 : vector<1x256xi32>
    %cst_131 = arith.constant 0.000000e+00 : f32
    %152 = vector.shape_cast %151 : vector<1x256xi1> to vector<1x256xi1>
    %153 = vector.broadcast %152 : vector<1x256xi1> to vector<4x256xi1>
    %154 = vector.broadcast %cst_131 : f32 to vector<4x256xf32>
    %155 = arith.select %153, %149, %154 : vector<4x256xi1>, vector<4x256xf32>
    %c3_132 = arith.constant 3 : index
    %c1_133 = arith.constant 1 : index
    %c0_134 = arith.constant 0 : index
    %c0_135 = arith.constant 0 : index
    %156 = vector.load %arg4[%c3_132, %c1_133, %c0_134, %c0_135] : memref<4x4x4x4xf32, #tpu.memory_space<vmem>>, vector<1x1x4x4xf32>
    %157 = vector.shape_cast %156 : vector<1x1x4x4xf32> to vector<4x4xf32>
    %cst_136 = arith.constant dense<0.000000e+00> : vector<4x256xf32>
    %158 = tpu.matmul %157, %155, %cst_136 {dimension_numbers = #tpu.dot_dimension_numbers<[1], [0], [0], [1], [0, 0, 1, 1], [], []>} : vector<4x4xf32>, vector<4x256xf32>, vector<4x256xf32> -> vector<4x256xf32>
    %159 = arith.addf %148, %158 : vector<4x256xf32>
    %c0_137 = arith.constant 0 : index
    %c144_138 = arith.constant 144 : index
    %160 = vector.load %arg7[%c0_137, %c144_138] : memref<4x512xf32, #tpu.memory_space<vmem>>, vector<4x256xf32>
    %c15_i32_139 = arith.constant 15 : i32
    %161 = vector.broadcast %c15_i32_139 : i32 to vector<1x256xi32>
    %162 = arith.cmpi slt, %7, %161 : vector<1x256xi32>
    %cst_140 = arith.constant 0.000000e+00 : f32
    %163 = vector.shape_cast %162 : vector<1x256xi1> to vector<1x256xi1>
    %164 = vector.broadcast %163 : vector<1x256xi1> to vector<4x256xi1>
    %165 = vector.broadcast %cst_140 : f32 to vector<4x256xf32>
    %166 = arith.select %164, %160, %165 : vector<4x256xi1>, vector<4x256xf32>
    %c3_141 = arith.constant 3 : index
    %c2_142 = arith.constant 2 : index
    %c0_143 = arith.constant 0 : index
    %c0_144 = arith.constant 0 : index
    %167 = vector.load %arg4[%c3_141, %c2_142, %c0_143, %c0_144] : memref<4x4x4x4xf32, #tpu.memory_space<vmem>>, vector<1x1x4x4xf32>
    %168 = vector.shape_cast %167 : vector<1x1x4x4xf32> to vector<4x4xf32>
    %cst_145 = arith.constant dense<0.000000e+00> : vector<4x256xf32>
    %169 = tpu.matmul %168, %166, %cst_145 {dimension_numbers = #tpu.dot_dimension_numbers<[1], [0], [0], [1], [0, 0, 1, 1], [], []>} : vector<4x4xf32>, vector<4x256xf32>, vector<4x256xf32> -> vector<4x256xf32>
    %170 = arith.addf %159, %169 : vector<4x256xf32>
    %c0_146 = arith.constant 0 : index
    %c145 = arith.constant 145 : index
    %171 = vector.load %arg7[%c0_146, %c145] : memref<4x512xf32, #tpu.memory_space<vmem>>, vector<4x256xf32>
    %c15_i32_147 = arith.constant 15 : i32
    %172 = vector.broadcast %c15_i32_147 : i32 to vector<1x256xi32>
    %173 = arith.cmpi slt, %7, %172 : vector<1x256xi32>
    %c15_i32_148 = arith.constant 15 : i32
    %174 = vector.broadcast %c15_i32_148 : i32 to vector<1x256xi32>
    %175 = arith.cmpi slt, %8, %174 : vector<1x256xi32>
    %176 = arith.andi %173, %175 : vector<1x256xi1>
    %cst_149 = arith.constant 0.000000e+00 : f32
    %177 = vector.shape_cast %176 : vector<1x256xi1> to vector<1x256xi1>
    %178 = vector.broadcast %177 : vector<1x256xi1> to vector<4x256xi1>
    %179 = vector.broadcast %cst_149 : f32 to vector<4x256xf32>
    %180 = arith.select %178, %171, %179 : vector<4x256xi1>, vector<4x256xf32>
    %c3_150 = arith.constant 3 : index
    %c3_151 = arith.constant 3 : index
    %c0_152 = arith.constant 0 : index
    %c0_153 = arith.constant 0 : index
    %181 = vector.load %arg4[%c3_150, %c3_151, %c0_152, %c0_153] : memref<4x4x4x4xf32, #tpu.memory_space<vmem>>, vector<1x1x4x4xf32>
    %182 = vector.shape_cast %181 : vector<1x1x4x4xf32> to vector<4x4xf32>
    %cst_154 = arith.constant dense<0.000000e+00> : vector<4x256xf32>
    %183 = tpu.matmul %182, %180, %cst_154 {dimension_numbers = #tpu.dot_dimension_numbers<[1], [0], [0], [1], [0, 0, 1, 1], [], []>} : vector<4x4xf32>, vector<4x256xf32>, vector<4x256xf32> -> vector<4x256xf32>
    %184 = arith.addf %170, %183 : vector<4x256xf32>
    %185 = vector.broadcast %9 : vector<4x1xf32> to vector<4x256xf32>
    %186 = arith.addf %184, %185 : vector<4x256xf32>
    %c0_155 = arith.constant 0 : index
    %c1_156 = arith.constant 1 : index
    %c1_157 = arith.constant 1 : index
    %c0_158 = arith.constant 0 : index
    %c0_159 = arith.constant 0 : index
    %187 = vector.load %arg6[%c0_155, %c1_156, %c1_157, %c0_158, %c0_159] : memref<1x2x2x4x256xf32, #tpu.memory_space<vmem>>, vector<1x1x1x4x256xf32>
    %188 = vector.shape_cast %187 : vector<1x1x1x4x256xf32> to vector<4x256xf32>
    %189 = vector.shape_cast %186 : vector<4x256xf32> to vector<1x1x1x4x256xf32>
    tpu.vector_store %arg6[%c0_155, %c1_156, %c1_157, %c0_158, %c0_159], %189 {strides = array<i32>} : memref<1x2x2x4x256xf32, #tpu.memory_space<vmem>>, vector<1x1x1x4x256xf32>,
    return
  }
  func.func @transform_0(%arg0: i32, %arg1: i32) -> (i32, i32, i32) {
    %c0_i32 = arith.constant 0 : i32
    %c0_i32_0 = arith.constant 0 : i32
    %c0_i32_1 = arith.constant 0 : i32
    return %arg0, %c0_i32, %c0_i32_0 : i32, i32, i32
  }
  func.func @transform_1(%arg0: i32, %arg1: i32) -> (i32, i32) {
    %c0_i32 = arith.constant 0 : i32
    %c0_i32_0 = arith.constant 0 : i32
    %c0_i32_1 = arith.constant 0 : i32
    return %c0_i32, %c0_i32_0 : i32, i32
  }
  func.func @transform_2(%arg0: i32, %arg1: i32) -> (i32, i32, i32, i32) {
    %c0_i32 = arith.constant 0 : i32
    %c0_i32_0 = arith.constant 0 : i32
    %c0_i32_1 = arith.constant 0 : i32
    %c0_i32_2 = arith.constant 0 : i32
    return %c0_i32, %c0_i32_0, %arg1, %c0_i32_1 : i32, i32, i32, i32
  }
  func.func @transform_3(%arg0: i32, %arg1: i32) -> (i32, i32) {
    %c0_i32 = arith.constant 0 : i32
    %c0_i32_0 = arith.constant 0 : i32
    return %arg1, %c0_i32 : i32, i32
  }
  func.func @transform_4(%arg0: i32, %arg1: i32) -> (i32, i32, i32, i32, i32) {
    %c0_i32 = arith.constant 0 : i32
    %c0_i32_0 = arith.constant 0 : i32
    %c0_i32_1 = arith.constant 0 : i32
    %c0_i32_2 = arith.constant 0 : i32
    return %arg0, %c0_i32, %c0_i32_0, %arg1, %c0_i32_1 : i32, i32, i32, i32, i32
  }
}

</mosaic_0001>

<bundles_post_ra>
// kernel: tpu_custom_call.1
= control target key start
LH: loop header
LB: loop body
LE: loop exit
PB: predicated region body
PF: predicated region fallthrough
CT: control target
= control target key end

     0   :  { %s2887_s0 = inlined_call_operand.hbm [shape: f32[2,4,256], index: 0, kind: input, shape index: {}]   ;;  %s2888_s1 = inlined_call_operand.vmem [shape: s32[2,256], index: 1, kind: input, shape index: {}]   ;;  %s2889_s2 = inlined_call_operand.hbm [shape: f32[4,4,4,4], index: 2, kind: input, shape index: {}]   ;;  %s2890_s3 = inlined_call_operand.vmem [shape: f32[4,1], index: 3, kind: input, shape index: {}]   ;;  %s2891_s4 = inlined_call_operand.hbm [shape: f32[2,2,2,4,256], index: 4, kind: output, shape index: {}]  }
   0x1   :  { %2893 = sst [smem:[#allocation12_spill]] %s2889_s2 }
   0x2   :  { %9 = vsyncpa [#allocation4], 0 }
   0x3   :  { %11 = vsyncpa [#allocation4 + $0x1], 0 }
   0x4   :  { %12 = vsyncpa [#allocation7], 0 }
   0x5   :  { %13 = vsyncpa [#allocation5], 0 }
   0x6   :  { %15 = vsyncpa [#allocation5 + $0x1], 0  ;;  %s2413_s15 = smov 0   ;;  %s2415_s16 = smov 0  }
   0x7   :  { %s2417_s17 = smov 0   ;;  %s2419_s18 = smov 0  }
   0x8   :  { %s2421_s19 = smov 0   ;;  %s2423_s20 = smov 0  }
   0x9 LB: > { %s2069_s21 = sadd.s32 4294967295, %s2369_s20   ;;  %s2070_s22 = sadd.s32 4294967294, %s2369_s20   ;;  %s2369_s20 = sphi %s2423_s20, %s21_s20   ;;  %s2365_s19 = sphi %s2421_s19, %s2937_s19   ;;  %s2361_s18 = sphi %s2419_s18, %s2936_s18   ;;  %s2357_s17 = sphi %s2417_s17, %s2935_s17   ;;  %s2353_s16 = sphi %s2415_s16, %s2934_s16   ;;  %s2349_s15 = sphi %s2413_s15, %s2933_s15  }
   0xa   : > { %p53_p0 = scmp.ne.s32.totalorder %s2353_s16, %s2349_s15  ;;  %p2447_p1 = scmp.eq.s32.totalorder %s2069_s21, 0 }
   0xb   : > { %p2451_p2 = scmp.eq.s32.totalorder %s2069_s21, 1  ;;  %p158_p3 = scmp.eq.s32.totalorder %s2070_s22, 1 }
   0xc   : > { %p2457_p4 = por %p2447_p1, %p53_p0  ;;  %p2071_p5 = scmp.ge.s32.totalorder %s2369_s20, 1 }
   0xd   : > { %p2462_p6 = por %p158_p3, %p53_p0  ;;  %p165_p7 = scmp.lt.s32.totalorder %s2369_s20, 3 }
   0xe   : > { %s2896_s25 = scalar_select %p2457_p4, 1, 0 }
   0xf   : > { %s2897_s26 = scalar_select %p2462_p6, 1, 0 }
  0x10   : > { %p2467_p8 = pnand %p2071_p5, %p165_p7  ;;  %s2371_s28 = smov [#allocation6]  }
  0x11   : > { %s182_s29 = sshll.u32 %s2371_s28, 4  ;;  %s33_s5 = sadd.s32 1, %s2365_s19  ;;  %s183_s29 = int_to_ptr.vmem [resolvable:$true] %s182_s29 }
  0x12   : > { %p2149_p9 = pneg %p2467_p8  ;;  %s2242_s6 = scalar_lea.vmem %s183_s29, 1024 }
  0x13   : > { %p2243_p13 = scmp.ne.s32.totalorder %s183_s29, %s2242_s6  ;;  %p2250_p5 = scmp.lt.s32.totalorder %s183_s29, %s183_s29 }
  0x14   : > { %p2476_p11 = pnand %p2149_p9, %p2447_p1  ;;  %p2251_p7 = scmp.lt.s32.totalorder %s2242_s6, %s2242_s6 }
  0x16   : > { %p2233_p12 = pneg %p2476_p11  ;;  %p2252_p6 = por %p2251_p7, %p2250_p5 }
  0x18   : > { %p2245_p0 = pnand %p2243_p13, %p2233_p12 }
  0x1a   : > { %p2246_p3 = pneg %p2245_p0 }
  0x1c   : > { %p2253_p4 = pnand %p2252_p6, %p2246_p3 }
  0x1e   : > { %2256 = shalt.err (!%p2253_p4)
}
  0x1f   : > { %s2372_s7 = smov 64   ;;  %s2373_s8 = smov 4  }
  0x20   : > { %s2900_s2 = sld [smem:[#allocation12_spill]]  ;;  %p35_p6 = scmp.ge.s32.totalorder %s33_s5, 2 }
  0x21   : > { %s40_s11 = sadd.s32 1, %s2357_s17  ;;  %p47_p4 = scmp.ne.s32.totalorder %s2357_s17, %s2353_s16 }
  0x22   : > { %p48_p9 = scmp.eq.s32.totalorder %s2369_s20, 0  ;;  %s2939_s5 = smov (%p35_p6, %s33_s5), 0 }
  0x23   : > { %p2500_p13 = por %p2451_p2, %p47_p4  ;;  %s37_s14 = ssub.s32 %s2365_s19, %s2939_s5 }
  0x24   : > { %p2494_p12 = por %p48_p9, %p47_p4  ;;  %p2162_p0 = scmp.lt.s32.totalorder %s2369_s20, 2 }
  0x25   : > { %s203_s21 = sand.u32 1, %s2357_s17  }
  0x26   : > { %2152 = dma.hbm_to_vmem [thread:$0]  (!%p2476_p11), %s2900_s2, 1024, %s183_s29, [#allocation7], %s2372_s7, %s2372_s7, %s2373_s8  }
  0x27   : > { %p38_p11 = scmp.eq.s32.totalorder %s37_s14, 0  ;;  %s2075_s22 = sshll.u32 %s203_s21, 3 }
  0x28   : > { %s2139_s29 = sshll.u32 %s2365_s19, 7  ;;  %s207_s8 = scalar_lea.vmem [#allocation3], %s2075_s22 }
  0x29   : > { %s2509_s28 = scalar_select %p38_p11, %s2357_s17, %s40_s11  }
  0x2a   : > { %s213_s7 = scalar_lea.hbm %s2887_s0, %s2139_s29  ;;  %s215_s9 = sshll.u32 %s207_s8, 4  ;;  %s216_s9 = int_to_ptr.vmem [resolvable:$true] %s215_s9 }
  0x2b   : > { %p2517_p2 = pnand %p2162_p0, %p2494_p12  ;;  %s204_s10 = scalar_lea.sflag [#allocation4], %s203_s21 }
  0x2c   : > { %s2270_s14 = scalar_lea.vmem %s216_s9, 128  ;;  %s2374_s11 = smov [#allocation3]  }
  0x2d   : > { %p2259_p3 = pneg %p2517_p2  ;;  %p2271_p5 = scmp.ne.s32.totalorder %s216_s9, %s2270_s14 }
  0x2e   : > { %s2275_s2 = sshll.u32 %s2374_s11, 4  ;;  %s2276_s2 = int_to_ptr.vmem [resolvable:$false] %s2275_s2 }
  0x2f   : > { %p2273_p7 = pnand %p2271_p5, %p2259_p3  ;;  %s2277_s29 = scalar_lea.vmem %s2276_s2, 256 }
  0x30   : > { %p2278_p4 = scmp.lt.s32.totalorder %s216_s9, %s2276_s2  ;;  %p2279_p9 = scmp.lt.s32.totalorder %s2277_s29, %s2270_s14 }
  0x31   : > { %p2274_p6 = pneg %p2273_p7 }
  0x32   : > { %p2280_p11 = por %p2279_p9, %p2278_p4 }
  0x34   : > { %p2281_p10 = pnand %p2280_p11, %p2274_p6 }
  0x36   : > { %2284 = shalt.err (!%p2281_p10)
}
  0x37   : > { %2156 = dma.hbm_to_vmem [thread:$0]  (!%p2517_p2), %s213_s7, 128, %s216_s9, %s204_s10  }
  0x38   : > { %224 = sbr.rel (%p2467_p8) target bundleno = 476 (0x1dc), region = 36  ;;  %s2528_s12 = sand.u32 (!%p2467_p8), 1, %s2353_s16  }
  0x39   : > { %s2079_s21 = sshll.u32 (!%p2467_p8), %s2528_s12, 3  ;;  %s227_s22 = scalar_lea.sflag (!%p2467_p8), [#allocation4], %s2528_s12 }
  0x3a   : > { %s230_s30 = scalar_lea.vmem (!%p2467_p8), [#allocation3], %s2079_s21  ;;  %p2904_p12 = scmp.ne.s32.totalorder (!%p2467_p8), %s2896_s25, 0 }
  0x3d   : > { %2336 = dma.done.wait (%p2904_p12), %s227_s22, 128  }
  0x3e   : > { %2338 = vsyncadd (%p2904_p12), %s227_s22, 4294967168 }
  0x3f   : > { %2340 = dma.done.wait (%p2447_p1), [#allocation7], 1024  }
  0x40   : > { %2342 = vsyncadd (%p2447_p1), [#allocation7], 4294966272  ;;  %v2375_v0 = vmov 0.0   ;;  %v2544_v1 = vld [vmem:[%s230_s30] sm:$0xff]  ;;  %v2376_v2 = vmov 0   ;;  %s2377_s2 = smov 16   ;;  %v281_v18 = vlaneseq }
  0x41   : > { %267 = vst [vmem:[#allocation2] sm:$0xf] %v2375_v0  ;;  %270 = vst [vmem:[#allocation2 + $0xc] sm:$0xf] %v2375_v0  ;;  %409 = vmatprep.mubr.f32.mxu0 %v2375_v0  ;;  %489 = vmatprep.mubr.f32.mxu1 %v2375_v0  ;;  %s2378_s23 = smov 17   ;;  %s2379_s25 = smov 1   ;;  %v2550_v8 = vcombine.high %v2544_v1, %v2544_v1 }
  0x42   : > { %269 = vst [vmem:[#allocation2 + $0x4] sm:$0xff] %v2544_v1  ;;  %2228 = vset.pattern.permute.xlu0 %v2376_v2  ;;  %s2380_s27 = smov 15   ;;  %s2381_s6 = smov 127   ;;  %v274_v16 = vld [vmem:[%s2890_s3] sm:$0xf]  ;;  %v282_v20 = vshrl.u32 %v281_v18, 7 }
  0x43   : > { %s2382_s7 = smov 113   ;;  %s2383_s8 = smov 112   ;;  %v2570_v17 = vld [vmem:[%s2888_s1] ss:$2 sm:$0x3]  ;;  %vm300_vm5 = vcmask 138240  }
  0x44   : > { %s2384_s9 = smov 111   ;;  %v2575_v19 = vld [vmem:[%s2888_s1 + $0x1] ss:$2 sm:$0x3]  ;;  %vm277_vm0 = vcmp.ge.s32.totalorder %v2570_v17, 1  ;;  %v2583_v23 = vsub.s32 1, %v282_v20 }
  0x45   : > { %vm278_vm1 = vcmp.ge.s32.totalorder %v2575_v19, 1  ;;  %v308_v24 = vsel %vm277_vm0, 1, %v2376_v2  ;;  %v2589_v26 = vsub.s32 0, %v282_v20  ;;  %vm725_vm3 = vcmp.lt.s32.totalorder %v2575_v19, 15  ;;  %v333_v53 = vld [vmem:[#allocation6 + $0x4] sm:$0xf] }
  0x46   : > { %vm279_vm2 = vmand %vm277_vm0, %vm278_vm1  ;;  %v316_v29 = vrot.slane %v308_v24, %v2583_v23  ;;  %v498_v35 = vsel %vm278_vm1, 1, %v2376_v2  ;;  %vm325_vm6 = vcmask 130048   ;;  %vm338_vm11 = vcmask 1043456   ;;  %v307_v58 = vld [vmem:[#allocation6] sm:$0xf]  ;;  %s2081_s22 = sshll.u32 %s2528_s12, 5 }
  0x47   : > { %v280_v25 = vsel %vm279_vm2, 1, %v2376_v2  ;;  %v312_v32 = vrot.slane %v308_v24, %v2589_v26  ;;  %vm726_vm4 = vmand %vm277_vm0, %vm725_vm3  ;;  %v502_v40 = vrot.slane %v498_v35, %v2589_v26  ;;  %v506_v41 = vrot.slane %v498_v35, %v2583_v23  ;;  %v915_v24 = vld [vmem:[#allocation6 + $0x18] sm:$0xf]  ;;  %s2820_s30 = scalar_lea.vmem [#allocation8], %s2081_s22 }
  0x48   : > { %v999_v9 = vld [vmem:[#allocation2 + $0xc] sm:$0xf]  ;;  %v288_v30 = vrot.slane %v280_v25, %v2583_v23  ;;  %v284_v31 = vrot.slane %v280_v25, %v2589_v26  ;;  %vm2603_vm7 = vcmp.eq.s32.totalorder %v316_v29, 1  ;;  %vm518_vm12 = vcmask 7168  }
  0x49   : > { %v276_v3 = vld [vmem:[#allocation2 + $0x8] sm:$0xf]  ;;  %v275_v4 = vld [vmem:[#allocation2] sm:$0xff]  ;;  %v1302_v11 = vld [vmem:[#allocation2 + $0xc] sm:$0xf]  ;;  %vm2615_vm10 = vcmp.eq.s32.totalorder %v312_v32, 1 }
  0x4a   : > { %323 = vrot.lane.b32.xlu0 %v276_v3, %s2377_s2  ;;  %319 = vrot.lane.b32.xlu1 %v275_v4, %s2377_s2  ;;  %v497_v5 = vld [vmem:[#allocation2 + $0x8] sm:$0xf]  ;;  %v511_v6 = vcombine.high %v275_v4, %v275_v4  ;;  %v1417_v12 = vld [vmem:[#allocation2 + $0xc] sm:$0xf]  ;;  %vm2607_vm8 = vcmp.eq.s32.totalorder %v288_v30, 1  ;;  %vm2611_vm9 = vcmp.eq.s32.totalorder %v284_v31, 1 }
  0x4b   : > { %v707_v7 = vld [vmem:[#allocation2 + $0x8] sm:$0xf]  ;;  %v1541_v13 = vld [vmem:[#allocation2 + $0xc] sm:$0xf]  ;;  %v727_v44 = vsel %vm726_vm4, 1, %v2376_v2  ;;  %vm334_vm13 = vcmask 31744  }
  0x4c   : > { %v1120_v10 = vld [vmem:[#allocation2 + $0x8] sm:$0xf]  ;;  %v1720_v14 = vld [vmem:[#allocation2 + $0xc] sm:$0xf]  ;;  %vm2636_vm14 = vcmp.eq.s32.totalorder %v502_v40, 1  ;;  %vm2640_vm15 = vcmp.eq.s32.totalorder %v506_v41, 1  ;;  %v731_v56 = vrot.slane %v727_v44, %v2589_v26  ;;  %v735_v57 = vrot.slane %v727_v44, %v2583_v23 }
  0x4d   : > { %v1821_v15 = vld [vmem:[#allocation2 + $0xc] sm:$0xf]  ;;  %vm744_vm0 = vcmask 121856   ;;  %v1000_v20 = vsel %vm725_vm3, 1, %v2376_v2  ;;  %v724_v31 = vld [vmem:[#allocation6 + $0x10] sm:$0xf] }
  0x4e   : > { %298 = vrot.lane.b32.xlu0 %v276_v3, %s2378_s23  ;;  %294 = vrot.lane.b32.xlu1 %v275_v4, %s2378_s23  ;;  %vm2660_vm2 = vcmp.eq.s32.totalorder %v731_v56, 1  ;;  %vm2664_vm4 = vcmp.eq.s32.totalorder %v735_v57, 1  ;;  %v1004_v25 = vrot.slane %v1000_v20, %v2589_v26  ;;  %v1137_v56 = vld [vmem:[#allocation6 + $0x20] sm:$0xf] }
  0x52   : > { %512 = vrot.lane.b32.xlu0 %v275_v4, %s2379_s25  ;;  %516 = vrot.lane.b32.xlu1 %v497_v5, %s2379_s25 }
  0x56   : > { %296 = vrot.lane.b32.xlu1 %v511_v6, %s2378_s23  ;;  %321 = vrot.lane.b32.xlu0 %v511_v6, %s2377_s2  ;;  %s2140_s23 = sshll.u32 %s2361_s18, 9  ;;  %s2385_s18 = smov [#allocation8]  }
  0x5a   : > { %740 = vrot.lane.b32.xlu1 %v511_v6, %s2380_s27  ;;  %514 = vrot.lane.b32.xlu0 %v511_v6, %s2379_s25 }
  0x5e   : > { %738 = vrot.lane.b32.xlu1 %v275_v4, %s2380_s27  ;;  %742 = vrot.lane.b32.xlu0 %v707_v7, %s2380_s27 }
  0x62   : > { %715 = vrot.lane.b32.xlu1 %v707_v7, %s2377_s2  ;;  %713 = vrot.lane.b32.xlu0 %v511_v6, %s2377_s2  ;;  %v611_v7 = vld [vmem:[#allocation6 + $0xc] sm:$0xf] }
  0x66   : > { %1016 = vrot.lane.b32.xlu1 %v2550_v8, %s2381_s6  ;;  %711 = vrot.lane.b32.xlu0 %v275_v4, %s2377_s2  ;;  %s1958_s2 = sshll.u32 %s2820_s30, 4  ;;  %s2831_s2 = int_to_ptr.vmem [resolvable:$true] %s1958_s2 }
  0x6a   : > { %1014 = vrot.lane.b32.xlu1 %v2544_v1, %s2381_s6  ;;  %1018 = vrot.lane.b32.xlu0 %v999_v9, %s2381_s6 }
  0x6e   : > { %1128 = vrot.lane.b32.xlu1 %v1120_v10, %s2379_s25  ;;  %1126 = vrot.lane.b32.xlu0 %v511_v6, %s2379_s25 }
  0x72   : > { %1321 = vrot.lane.b32.xlu1 %v2550_v8, %s2382_s7  ;;  %1124 = vrot.lane.b32.xlu0 %v275_v4, %s2379_s25  ;;  %v526_v4 = vld [vmem:[#allocation6 + $0x8] sm:$0xf] }
  0x76   : > { %1319 = vrot.lane.b32.xlu1 %v2544_v1, %s2382_s7  ;;  %1323 = vrot.lane.b32.xlu0 %v1302_v11, %s2382_s7  ;;  %s1943_s7 = scalar_lea.sflag [#allocation5], %s2528_s12 }
  0x7a   : > { %1436 = vrot.lane.b32.xlu1 %v1417_v12, %s2383_s8  ;;  %1434 = vrot.lane.b32.xlu0 %v2550_v8, %s2383_s8 }
  0x7e   : > { %1547 = vrot.lane.b32.xlu1 %v2550_v8, %s2381_s6  ;;  %1432 = vrot.lane.b32.xlu0 %v2544_v1, %s2383_s8 }
  0x82   : > { %1545 = vrot.lane.b32.xlu1 %v2544_v1, %s2381_s6  ;;  %1549 = vrot.lane.b32.xlu0 %v1541_v13, %s2381_s6  ;;  %s2838_s6 = scalar_lea.hbm %s2891_s4, %s2140_s23 }
  0x86   : > { %1728 = vrot.lane.b32.xlu1 %v1720_v14, %s2383_s8  ;;  %1726 = vrot.lane.b32.xlu0 %v2550_v8, %s2383_s8 }
  0x8a   : > { %1839 = vrot.lane.b32.xlu1 %v2550_v8, %s2384_s9  ;;  %1724 = vrot.lane.b32.xlu0 %v2544_v1, %s2383_s8  ;;  %s2285_s8 = scalar_lea.vmem %s2831_s2, 512 }
  0x8b   : > { %p2286_p1 = scmp.ne.s32.totalorder %s2831_s2, %s2285_s8 }
  0x8d   : > { %p2287_p8 = pnand %p2286_p1, %p2500_p13 }
  0x8e   : > { %1837 = vrot.lane.b32.xlu1 %v2544_v1, %s2384_s9  ;;  %1841 = vrot.lane.b32.xlu0 %v1821_v15, %s2384_s9  ;;  %v752_v15 = vld [vmem:[#allocation6 + $0x14] sm:$0xf]  ;;  %s2289_s9 = sshll.u32 %s2385_s18, 4  ;;  %s2290_s9 = int_to_ptr.vmem [resolvable:$false] %s2289_s9 }
  0x8f   : > { %p2288_p10 = pneg %p2287_p8  ;;  %s2291_s24 = scalar_lea.vmem %s2290_s9, 1024 }
  0x90   : > { %p2292_p0 = scmp.lt.s32.totalorder %s2831_s2, %s2290_s9  ;;  %p2293_p2 = scmp.lt.s32.totalorder %s2291_s24, %s2285_s8 }
  0x92   : > { %696 = vperm.xlu0 %2228, %v274_v16   ;;  %p2294_p3 = por %p2293_p2, %p2292_p0 }
  0x94   : > { %p2295_p5 = pnand %p2294_p3, %p2288_p10 }
  0xbc   : > { %v324_v21 = vpop.permute.xlu0 %323  ;;  %v320_v22 = vpop.permute.xlu1 %319 }
  0xc0   : > { %v299_v27 = vpop.permute.xlu0 %298  ;;  %v295_v28 = vpop.permute.xlu1 %294 }
  0xc4   : > { %v513_v33 = vpop.permute.xlu0 %512  ;;  %v517_v34 = vpop.permute.xlu1 %516 }
  0xc8   : > { %v297_v42 = vpop.permute.xlu1 %296  ;;  %v322_v43 = vpop.permute.xlu0 %321 }
  0xc9   : > { %v301_v45 = vsel %vm300_vm5, %v295_v28, %v297_v42  ;;  %v326_v46 = vsel %vm325_vm6, %v320_v22, %v322_v43  ;;  %v327_v47 = vsel %vm325_vm6, %v322_v43, %v324_v21  ;;  %v302_v48 = vsel %vm300_vm5, %v297_v42, %v299_v27  ;;  %v1028_v42 = vld [vmem:[#allocation6 + $0x1c] sm:$0xf] }
  0xca   : > { %v331_v49 = vsel %vm2603_vm7, %v327_v47, 0.0  ;;  %v306_v50 = vsel %vm2607_vm8, %v302_v48, 0.0  ;;  %v305_v51 = vsel %vm2611_vm9, %v301_v45, 0.0  ;;  %v330_v52 = vsel %vm2615_vm10, %v326_v46, 0.0 }
  0xcb   : > { %2083 = vmatprep.subr.msk.mxu0 %vm338_vm11, %v331_v49  ;;  %2086 = vmatprep.subr.msk.mxu1 %vm338_vm11, %v306_v50  ;;  %v1008_v27 = vrot.slane %v1000_v20, %v2583_v23  ;;  %vm1303_vm5 = vcmp.lt.s32.totalorder %v2570_v17, 15  ;;  %vm2708_vm8 = vcmp.eq.s32.totalorder %v1004_v25, 1 }
  0xcc   : > { %2087 = vmatpush1.msk.msra.mxu1 %vm338_vm11, %v305_v51  ;;  %v741_v59 = vpop.permute.xlu1 %740  ;;  %2084 = vmatpush1.msk.msra.mxu0 %vm338_vm11, %v330_v52  ;;  %v515_v60 = vpop.permute.xlu0 %514  ;;  %vm1304_vm9 = vmand %vm1303_vm5, %vm278_vm1  ;;  %v1418_v52 = vsel %vm1303_vm5, 1, %v2376_v2  ;;  %vm1325_vm1 = vcmask 924672  }
  0xcd   : > { %v519_v61 = vsel %vm518_vm12, %v513_v33, %v515_v60  ;;  %v520_v62 = vsel %vm518_vm12, %v515_v60, %v517_v34  ;;  %2085 = vmatmul.mubr.msk.f32.vlgmr.msra.gmra.mxu0 %vm334_vm13, %v333_v53  ;;  %2092 = vmatprep.subr.msk.mxu1 %vm338_vm11, %v2550_v8  ;;  %v1140_v33 = vld [vmem:[#allocation6 + $0x24] sm:$0xf]  ;;  %v1305_v45 = vsel %vm1304_vm9, 1, %v2376_v2  ;;  %v1422_v5 = vrot.slane %v1418_v52, %v2589_v26  ;;  %v1737_v34 = vld [vmem:[#allocation6 + $0x38] sm:$0xf] }
  0xce   : > { %v523_v63 = vsel %vm2636_vm14, %v519_v61, 0.0  ;;  %v524_v3 = vsel %vm2640_vm15, %v520_v62, 0.0  ;;  %600 = vmatprep.mubr.f32.mxu0 %v2375_v0  ;;  %2088 = vmatmul.mubr.msk.f32.vlgmr.msra.gmra.mxu1 %vm334_vm13, %v307_v58  ;;  %v1309_v48 = vrot.slane %v1305_v45, %v2589_v26  ;;  %v1313_v49 = vrot.slane %v1305_v45, %v2583_v23 }
  0xcf   : > { %2089 = vmatprep.subr.msk.mxu0 %vm338_vm11, %v524_v3  ;;  %2093 = vmatpush1.msk.msra.mxu1 %vm338_vm11, %v2544_v1  ;;  %v1426_v58 = vrot.slane %v1418_v52, %v2583_v23  ;;  %v1333_v3 = vld [vmem:[#allocation6 + $0x28] sm:$0xf] }
  0xd0   : > { %v739_v9 = vpop.permute.xlu1 %738  ;;  %2090 = vmatpush1.msk.msra.mxu0 %vm338_vm11, %v523_v63  ;;  %v743_v10 = vpop.permute.xlu0 %742  ;;  %685 = vmatprep.mubr.f32.mxu1 %v2375_v0 }
  0xd1   : > { %v745_v11 = vsel %vm744_vm0, %v739_v9, %v741_v59  ;;  %v746_v12 = vsel %vm744_vm0, %v741_v59, %v743_v10  ;;  %2091 = vmatmul.mubr.msk.f32.vlgmr.msra.gmra.mxu0 %vm334_vm13, %v526_v4  ;;  %vm2770_vm0 = vcmp.eq.s32.totalorder %v1422_v5, 1 }
  0xd2   : > { %v749_v13 = vsel %vm2660_vm2, %v745_v11, 0.0  ;;  %v750_v14 = vsel %vm2664_vm4, %v746_v12, 0.0  ;;  %2094 = vmatmul.mubr.msk.f32.vlgmr.msra.gmra.mxu1 %vm334_vm13, %v611_v7  ;;  %826 = vmatprep.mubr.f32.mxu0 %v2375_v0  ;;  %vm1822_vm2 = vmand %vm1303_vm5, %vm725_vm3  ;;  %vm1843_vm3 = vcmask 908288  }
  0xd3   : > { %2095 = vmatprep.subr.msk.mxu0 %vm338_vm11, %v750_v14  ;;  %906 = vmatprep.mubr.f32.mxu1 %v2375_v0 }
  0xd4   : > { %v716_v16 = vpop.permute.xlu1 %715  ;;  %2096 = vmatpush1.msk.msra.mxu0 %vm338_vm11, %v749_v13  ;;  %v714_v18 = vpop.permute.xlu0 %713 }
  0xd5   : > { %v718_v21 = vsel %vm325_vm6, %v714_v18, %v716_v16  ;;  %2097 = vmatmul.mubr.msk.f32.vlgmr.msra.gmra.mxu0 %vm334_vm13, %v752_v15  ;;  %2101 = vmatprep.subr.msk.mxu0 %vm338_vm11, %v2550_v8  ;;  %v1446_v15 = vld [vmem:[#allocation6 + $0x2c] sm:$0xf] }
  0xd6   : > { %v722_v22 = vsel %vm2603_vm7, %v718_v21, 0.0  ;;  %2102 = vmatpush1.msk.msra.mxu0 %vm338_vm11, %v2544_v1  ;;  %989 = vmatprep.mubr.f32.mxu0 %v2375_v0  ;;  %vm1020_vm7 = vcmask 1039360  }
  0xd7   : > { %2098 = vmatprep.subr.msk.mxu1 %vm338_vm11, %v722_v22  ;;  %2108 = vmatprep.subr.msk.mxu0 %vm338_vm11, %v2550_v8 }
  0xd8   : > { %v1017_v28 = vpop.permute.xlu1 %1016  ;;  %v712_v29 = vpop.permute.xlu0 %711 }
  0xd9   : > { %v717_v30 = vsel %vm325_vm6, %v712_v29, %v714_v18  ;;  %2103 = vmatmul.mubr.msk.f32.vlgmr.msra.gmra.mxu0 %vm334_vm13, %v915_v24  ;;  %vm2712_vm6 = vcmp.eq.s32.totalorder %v1008_v27, 1  ;;  %v1539_v24 = vld [vmem:[#allocation6 + $0x30] sm:$0xf]  ;;  %v1558_v27 = vld [vmem:[#allocation6 + $0x34] sm:$0xf]  ;;  %v1823_v29 = vsel %vm1822_vm2, 1, %v2376_v2 }
  0xda   : > { %v721_v32 = vsel %vm2615_vm10, %v717_v30, 0.0  ;;  %2109 = vmatpush1.msk.msra.mxu0 %vm338_vm11, %v2544_v1  ;;  %1214 = vmatprep.mubr.f32.mxu0 %v2375_v0  ;;  %vm2748_vm10 = vcmp.eq.s32.totalorder %v1309_v48, 1  ;;  %v1827_v30 = vrot.slane %v1823_v29, %v2589_v26 }
  0xdb   : > { %2099 = vmatpush1.msk.msra.mxu1 %vm338_vm11, %v721_v32 }
  0xdc   : > { %v1015_v36 = vpop.permute.xlu1 %1014  ;;  %v1019_v37 = vpop.permute.xlu0 %1018  ;;  %2100 = vmatmul.mubr.msk.f32.vlgmr.msra.gmra.mxu1 %vm334_vm13, %v724_v31  ;;  %v1831_v31 = vrot.slane %v1823_v29, %v2583_v23  ;;  %vm1832_vm4 = vcmp.eq.s32.totalorder %v1827_v30, 1 }
  0xdd   : > { %v1021_v38 = vsel %vm1020_vm7, %v1015_v36, %v1017_v28  ;;  %v1022_v39 = vsel %vm1020_vm7, %v1017_v28, %v1019_v37  ;;  %1102 = vmatprep.mubr.f32.mxu1 %v2375_v0  ;;  %2110 = vmatmul.mubr.msk.f32.vlgmr.msra.gmra.mxu0 %vm334_vm13, %v1140_v33 }
  0xde   : > { %v1025_v40 = vsel %vm2708_vm8, %v1021_v38, 0.0  ;;  %v1026_v41 = vsel %vm2712_vm6, %v1022_v39, 0.0  ;;  %1407 = vmatprep.mubr.f32.mxu0 %v2375_v0  ;;  %vm1833_vm5 = vcmp.eq.s32.totalorder %v1831_v31, 1  ;;  %v1851_v39 = vld [vmem:[#allocation6 + $0x3c] sm:$0xf] }
  0xdf   : > { %2104 = vmatprep.subr.msk.mxu1 %vm338_vm11, %v1026_v41 }
  0xe0   : > { %v1129_v43 = vpop.permute.xlu1 %1128  ;;  %2105 = vmatpush1.msk.msra.mxu1 %vm338_vm11, %v1025_v40  ;;  %v1127_v44 = vpop.permute.xlu0 %1126 }
  0xe1   : > { %v1131_v46 = vsel %vm518_vm12, %v1127_v44, %v1129_v43  ;;  %2106 = vmatmul.mubr.msk.f32.vlgmr.msra.gmra.mxu1 %vm334_vm13, %v1028_v42 }
  0xe2   : > { %v1135_v47 = vsel %vm2640_vm15, %v1131_v46, 0.0  ;;  %1294 = vmatprep.mubr.f32.mxu1 %v2375_v0  ;;  %vm1315_vm15 = vcmp.eq.s32.totalorder %v1313_v49, 1 }
  0xe3   : > { %2111 = vmatprep.subr.msk.mxu1 %vm338_vm11, %v1135_v47 }
  0xe4   : > { %v1322_v50 = vpop.permute.xlu1 %1321  ;;  %v1125_v51 = vpop.permute.xlu0 %1124 }
  0xe5   : > { %v1130_v53 = vsel %vm518_vm12, %v1125_v51, %v1127_v44  ;;  %vm1438_vm12 = vcmask 916480  }
  0xe6   : > { %v1134_v55 = vsel %vm2636_vm14, %v1130_v53, 0.0  ;;  %vm2758_vm14 = vcmp.eq.s32.totalorder %v1426_v58, 1 }
  0xe7   : > { %2112 = vmatpush1.msk.msra.mxu1 %vm338_vm11, %v1134_v55 }
  0xe8   : > { %v1320_v59 = vpop.permute.xlu1 %1319  ;;  %v1324_v60 = vpop.permute.xlu0 %1323  ;;  %2113 = vmatmul.mubr.msk.f32.vlgmr.msra.gmra.mxu1 %vm334_vm13, %v1137_v56 }
  0xe9   : > { %v1326_v61 = vsel %vm1325_vm1, %v1320_v59, %v1322_v50  ;;  %v1327_v62 = vsel %vm1325_vm1, %v1322_v50, %v1324_v60  ;;  %1520 = vmatprep.mubr.f32.mxu1 %v2375_v0 }
  0xea   : > { %v1330_v54 = vsel %vm2748_vm10, %v1326_v61, 0.0  ;;  %v1331_v63 = vsel %vm1315_vm15, %v1327_v62, 0.0 }
  0xeb   : > { %2114 = vmatprep.subr.msk.mxu0 %vm338_vm11, %v1331_v63 }
  0xec   : > { %v1437_v6 = vpop.permute.xlu1 %1436  ;;  %2115 = vmatpush1.msk.msra.mxu0 %vm338_vm11, %v1330_v54  ;;  %v1435_v7 = vpop.permute.xlu0 %1434 }
  0xed   : > { %v1440_v9 = vsel %vm1438_vm12, %v1435_v7, %v1437_v6  ;;  %2116 = vmatmul.mubr.msk.f32.vlgmr.msra.gmra.mxu0 %vm334_vm13, %v1333_v3 }
  0xee   : > { %v1444_v10 = vsel %vm2758_vm14, %v1440_v9, 0.0  ;;  %1632 = vmatprep.mubr.f32.mxu0 %v2375_v0 }
  0xef   : > { %2117 = vmatprep.subr.msk.mxu1 %vm338_vm11, %v1444_v10 }
  0xf0   : > { %v1548_v12 = vpop.permute.xlu1 %1547  ;;  %v1433_v13 = vpop.permute.xlu0 %1432 }
  0xf1   : > { %v1439_v14 = vsel %vm1438_vm12, %v1433_v13, %v1435_v7 }
  0xf2   : > { %v1443_v16 = vsel %vm2770_vm0, %v1439_v14, 0.0 }
  0xf3   : > { %2118 = vmatpush1.msk.msra.mxu1 %vm338_vm11, %v1443_v16 }
  0xf4   : > { %v1546_v18 = vpop.permute.xlu1 %1545  ;;  %v1550_v20 = vpop.permute.xlu0 %1549  ;;  %2119 = vmatmul.mubr.msk.f32.vlgmr.msra.gmra.mxu1 %vm334_vm13, %v1446_v15  ;;  %2124 = vmatprep.subr.msk.mxu1 %vm338_vm11, %v2550_v8 }
  0xf5   : > { %v1551_v21 = vsel %vm1020_vm7, %v1546_v18, %v1548_v12  ;;  %v1552_v22 = vsel %vm1020_vm7, %v1548_v12, %v1550_v20  ;;  %2125 = vmatpush1.msk.msra.mxu1 %vm338_vm11, %v2544_v1  ;;  %1712 = vmatprep.mubr.f32.mxu1 %v2375_v0 }
  0xf6   : > { %v1555_v25 = vsel %vm2708_vm8, %v1551_v21, 0.0  ;;  %v1556_v8 = vsel %vm2712_vm6, %v1552_v22, 0.0 }
  0xf7   : > { %2121 = vmatprep.subr.msk.mxu0 %vm338_vm11, %v1556_v8 }
  0xf8   : > { %v1729_v28 = vpop.permute.xlu1 %1728  ;;  %2122 = vmatpush1.msk.msra.mxu0 %vm338_vm11, %v1555_v25  ;;  %v1727_v1 = vpop.permute.xlu0 %1726  ;;  %2126 = vmatmul.mubr.msk.f32.vlgmr.msra.gmra.mxu1 %vm334_vm13, %v1539_v24 }
  0xf9   : > { %v1731_v17 = vsel %vm1438_vm12, %v1727_v1, %v1729_v28  ;;  %2123 = vmatmul.mubr.msk.f32.vlgmr.msra.gmra.mxu0 %vm334_vm13, %v1558_v27  ;;  %1925 = vmatprep.mubr.f32.mxu1 %v2375_v0 }
  0xfa   : > { %v1735_v19 = vsel %vm2758_vm14, %v1731_v17, 0.0  ;;  %1811 = vmatprep.mubr.f32.mxu0 %v2375_v0 }
  0xfb   : > { %2127 = vmatprep.subr.msk.mxu0 %vm338_vm11, %v1735_v19 }
  0xfc   : > { %v1840_v2 = vpop.permute.xlu1 %1839  ;;  %v1725_v32 = vpop.permute.xlu0 %1724 }
  0xfd   : > { %v1730_v33 = vsel %vm1438_vm12, %v1725_v32, %v1727_v1 }
  0xfe   : > { %v1734_v35 = vsel %vm2770_vm0, %v1730_v33, 0.0 }
  0xff   : > { %2128 = vmatpush1.msk.msra.mxu0 %vm338_vm11, %v1734_v35 }
 0x100   : > { %v1838_v0 = vpop.permute.xlu1 %1837  ;;  %v1842_v36 = vpop.permute.xlu0 %1841  ;;  %2129 = vmatmul.mubr.msk.f32.vlgmr.msra.gmra.mxu0 %vm334_vm13, %v1737_v34 }
 0x101   : > { %v1844_v26 = vsel %vm1843_vm3, %v1838_v0, %v1840_v2  ;;  %v1845_v37 = vsel %vm1843_vm3, %v1840_v2, %v1842_v36 }
 0x102   : > { %v1848_v23 = vsel %vm1832_vm4, %v1844_v26, 0.0  ;;  %v1849_v38 = vsel %vm1833_vm5, %v1845_v37, 0.0 }
 0x103   : > { %2130 = vmatprep.subr.msk.mxu1 %vm338_vm11, %v1849_v38 }
 0x104   : > { %2131 = vmatpush1.msk.msra.mxu1 %vm338_vm11, %v1848_v23 }
 0x105   : > { %2132 = vmatmul.mubr.msk.f32.vlgmr.msra.gmra.mxu1 %vm334_vm13, %v1851_v39 }
 0x10d   : > { %v2815_v50 = vpop.permute.xlu0 %696 }
 0x18d   : > { %v411_v40 = vpop.f32.mrf.mxu0 }
 0x18e   : > { %v491_v41 = vpop.f32.mrf.mxu1 }
 0x18f   : > { %v413_v42 = vpop.f32.mrf.mxu0  ;;  %v492_v43 = vadd.f32 %v491_v41, %v411_v40 }
 0x190   : > { %v493_v44 = vpop.f32.mrf.mxu1 }
 0x191   : > { %v494_v45 = vadd.f32 %v493_v44, %v413_v42  ;;  %v602_v46 = vpop.f32.mrf.mxu0 }
 0x192   : > { %v607_v47 = vadd.f32 %v602_v46, %v492_v43  ;;  %v687_v48 = vpop.f32.mrf.mxu1 }
 0x193   : > { %v604_v49 = vpop.f32.mrf.mxu0 }
 0x194   : > { %v608_v51 = vadd.f32 %v604_v49, %v494_v45  ;;  %v692_v52 = vadd.f32 %v687_v48, %v607_v47  ;;  %v689_v53 = vpop.f32.mrf.mxu1 }
 0x195   : > { %v828_v56 = vpop.f32.mrf.mxu0 }
 0x196   : > { %v693_v55 = vadd.f32 %v689_v53, %v608_v51  ;;  %v699_v57 = vadd.f32 %v2815_v50, %v692_v52 }
 0x197   : > { %v830_v58 = vpop.f32.mrf.mxu0 }
 0x198   : > { %v700_v59 = vadd.f32 %v2815_v50, %v693_v55 }
 0x199   : > { %v991_v61 = vpop.f32.mrf.mxu0 }
 0x19a   : > { %v703_v60 = vcombine.low %v699_v57, %v700_v59 }
 0x19b   : > { %v993_v3 = vpop.f32.mrf.mxu0 }
 0x19c   : > { %v908_v62 = vpop.f32.mrf.mxu1  ;;  %705 = vst [vmem:[%s2820_s30] sm:$0xff] %v703_v60 }
 0x19d   : > { %v909_v54 = vadd.f32 %v908_v62, %v828_v56  ;;  %v1216_v13 = vpop.f32.mrf.mxu0 }
 0x19e   : > { %v910_v63 = vpop.f32.mrf.mxu1 }
 0x19f   : > { %v911_v4 = vadd.f32 %v910_v63, %v830_v58  ;;  %v996_v5 = vadd.f32 %v991_v61, %v909_v54  ;;  %v1218_v18 = vpop.f32.mrf.mxu0 }
 0x1a1   : > { %v997_v6 = vadd.f32 %v993_v3, %v911_v4  ;;  %v1104_v7 = vpop.f32.mrf.mxu1 }
 0x1a2   : > { %v1109_v9 = vadd.f32 %v1104_v7, %v996_v5 }
 0x1a3   : > { %v1106_v10 = vpop.f32.mrf.mxu1 }
 0x1a4   : > { %v1111_v11 = vadd.f32 %v1109_v9, %v2815_v50  ;;  %v1110_v12 = vadd.f32 %v1106_v10, %v997_v6 }
 0x1a6   : > { %v1112_v14 = vadd.f32 %v1110_v12, %v2815_v50 }
 0x1a8   : > { %v1115_v15 = vcombine.low %v1111_v11, %v1112_v14  ;;  %v1296_v16 = vpop.f32.mrf.mxu1 }
 0x1a9   : > { %v1297_v21 = vadd.f32 %v1296_v16, %v1216_v13 }
 0x1aa   : > { %2107 = vst [vmem:[%s2820_s30 + $0x8] sm:$0xff] %v1115_v15  ;;  %v1298_v20 = vpop.f32.mrf.mxu1 }
 0x1ab   : > { %v1299_v24 = vadd.f32 %v1298_v20, %v1218_v18 }
 0x1ad   : > { %v1409_v22 = vpop.f32.mrf.mxu0 }
 0x1ae   : > { %v1414_v8 = vadd.f32 %v1409_v22, %v1297_v21 }
 0x1af   : > { %v1411_v25 = vpop.f32.mrf.mxu0 }
 0x1b0   : > { %v1415_v27 = vadd.f32 %v1411_v25, %v1299_v24 }
 0x1b4   : > { %v1522_v28 = vpop.f32.mrf.mxu1 }
 0x1b5   : > { %v1527_v1 = vadd.f32 %v1522_v28, %v1414_v8 }
 0x1b6   : > { %v1524_v29 = vpop.f32.mrf.mxu1 }
 0x1b7   : > { %v1529_v17 = vadd.f32 %v1527_v1, %v2815_v50  ;;  %v1528_v19 = vadd.f32 %v1524_v29, %v1415_v27 }
 0x1b8   : > { %v1714_v32 = vpop.f32.mrf.mxu1 }
 0x1b9   : > { %v1530_v30 = vadd.f32 %v1528_v19, %v2815_v50  ;;  %v1634_v31 = vpop.f32.mrf.mxu0 }
 0x1ba   : > { %v1716_v34 = vpop.f32.mrf.mxu1  ;;  %v1715_v35 = vadd.f32 %v1714_v32, %v1634_v31 }
 0x1bb   : > { %v1533_v2 = vcombine.low %v1529_v17, %v1530_v30  ;;  %v1636_v33 = vpop.f32.mrf.mxu0 }
 0x1bc   : > { %v1717_v36 = vadd.f32 %v1716_v34, %v1636_v33 }
 0x1bd   : > { %2120 = vst [vmem:[%s2820_s30 + $0x10] sm:$0xff] %v1533_v2 }
 0x1c0   : > { %v1813_v0 = vpop.f32.mrf.mxu0 }
 0x1c1   : > { %v1818_v37 = vadd.f32 %v1813_v0, %v1715_v35 }
 0x1c2   : > { %v1815_v26 = vpop.f32.mrf.mxu0 }
 0x1c3   : > { %v1819_v38 = vadd.f32 %v1815_v26, %v1717_v36 }
 0x1c5   : > { %v1927_v23 = vpop.f32.mrf.mxu1 }
 0x1c6   : > { %v1932_v39 = vadd.f32 %v1927_v23, %v1818_v37 }
 0x1c7   : > { %v1929_v40 = vpop.f32.mrf.mxu1 }
 0x1c8   : > { %v1933_v41 = vadd.f32 %v1929_v40, %v1819_v38  ;;  %v1934_v42 = vadd.f32 %v1932_v39, %v2815_v50 }
 0x1ca   : > { %v1935_v43 = vadd.f32 %v1933_v41, %v2815_v50 }
 0x1cc   : > { %v1938_v44 = vcombine.low %v1934_v42, %v1935_v43 }
 0x1ce   : > { %2133 = vst [vmem:[%s2820_s30 + $0x18] sm:$0xff] %v1938_v44 }
 0x1cf   : > { %2298 = shalt.err (!%p2295_p5)
}
 0x1d0   : > { %s2299_s10 = scalar_lea.hbm %s2838_s6, 512  ;;  %s2303_s29 = scalar_lea.hbm %s2891_s4, 1024 }
 0x1d1   : > { %p2300_p7 = scmp.ne.s32.totalorder %s2838_s6, %s2299_s10  ;;  %p2304_p9 = scmp.lt.s32.totalorder %s2838_s6, %s2891_s4 }
 0x1d2   : > { %p2305_p11 = scmp.lt.s32.totalorder %s2303_s29, %s2299_s10 }
 0x1d3   : > { %p2301_p6 = pnand %p2300_p7, %p2500_p13 }
 0x1d4   : > { %p2306_p12 = por %p2305_p11, %p2304_p9 }
 0x1d5   : > { %p2302_p4 = pneg %p2301_p6 }
 0x1d7   : > { %p2307_p1 = pnand %p2306_p12, %p2302_p4 }
 0x1d9   : > { %2310 = shalt.err (!%p2307_p1)
}
 0x1da   : > { %s2386_s30 = smov 128   ;;  %s2387_s23 = smov 8  }
 0x1db   : > { %2147 = dma.vmem_to_hbm [thread:$0]  (%p2500_p13), %s2831_s2, 512, %s2838_s6, %s1943_s7, %s2386_s30, %s2386_s30, %s2387_s23  }
 0x1dc PF: > { %s1973_s25 = sand.u32 1, %s2349_s15   ;;  %p2931_p8 = scmp.ne.s32.totalorder %s2897_s26, 0 }
 0x1dd   : > { %p2932_p10 = scmp.ge.s32.totalorder %s2369_s20, 2  ;;  %s1974_s27 = scalar_lea.sflag [#allocation5], %s1973_s25 }
 0x1df   : > { %p2158_p0 = pnand %p2932_p10, %p2931_p8 }
 0x1e1   : > { %p2159_p2 = pneg %p2158_p0 }
 0x1e3   : > { %2344 = dma.done.wait (%p2159_p2), %s1974_s27, 512  }
 0x1e4   : > { %2346 = vsyncadd (%p2159_p2), %s1974_s27, 4294966784  ;;  %s21_s20 = sadd.s32 1, %s2369_s20   ;;  %s2933_s15 = smov %s2353_s16 }
 0x1e5   : > { %p18_p3 = scmp.ge.s32.totalorder %s21_s20, 4   ;;  %s2934_s16 = smov %s2357_s17 }
 0x1e6   : > { %s2935_s17 = smov %s2509_s28  ;;  %s2936_s18 = smov %s2365_s19 }
 0x1e7   : > { %s2937_s19 = smov %s2939_s5  ;;  %20 = sbr.rel (!%p18_p3) target bundleno = 9 (0x9), region = 108 }
 0x1ec   :  { %1979 = vsyncpa [#allocation4], 1 }
 0x1ed   :  { %1981 = vsyncpa [#allocation4 + $0x1], 1 }
 0x1ee   :  { %1982 = vsyncpa [#allocation7], 1 }
 0x1ef   :  { %1983 = vsyncpa [#allocation5], 1 }
 0x1f0   :  { %1985 = vsyncpa [#allocation5 + $0x1], 1 }

</bundles_post_ra>
